<compile_context>
chip_gen: v5e
topology: v5e:2x2
jax: 0.10.0
libtpu: 0.0.40
codegen_flags: <defaults>
</compile_context>

<pallas_src>
import math

import jax
import jax.numpy as jnp
from jax.experimental import pallas as pl
from jax.experimental.pallas import tpu as pltpu

# Feature sizes for the three modalities (sum must be 199 = head input_size).
A_DIM, V_DIM, T_DIM = 88, 64, 47
IN_DIM = A_DIM + V_DIM + T_DIM          # 199
OUT_EMO = 6
OUT_SEN = 3
OUT_TOTAL = OUT_EMO + OUT_SEN           # 9 (fused head output width)

MAX_TB = 8192                            # batch tile rows (multiple of 8)
SMALL_B = 1024                           # below this, a single grid step
VMEM_LIMIT_BYTES = 48 * 1024 * 1024      # > v5e's 16 MiB scoped default, < v7x 64 MiB physical


def _round_up(x, m):
    return ((x + m - 1) // m) * m


def _head_kernel(a_ref, v_ref, t_ref, w_ref, b_ref, out_ref):
    """Fused two-head linear over the (implicitly concatenated) features.

    a_ref : [TB, 88]   audio features tile
    v_ref : [TB, 64]   video features tile
    t_ref : [TB, 47]   text features tile
    w_ref : [199, 9]   fused weight (emo ++ sen), VMEM-resident across steps
    b_ref : [1, 9]     fused bias (emo ++ sen), f32
    out_ref:[TB, 9]    fused logits (emo ++ sen)
    """
    # Static ref slices along sublane-aligned row offsets (0, 88, 152) are free.
    acc = jnp.dot(a_ref[...], w_ref[0:A_DIM, :],
                  preferred_element_type=jnp.float32)
    acc = acc + jnp.dot(v_ref[...], w_ref[A_DIM:A_DIM + V_DIM, :],
                        preferred_element_type=jnp.float32)
    acc = acc + jnp.dot(t_ref[...], w_ref[A_DIM + V_DIM:IN_DIM, :],
                        preferred_element_type=jnp.float32)
    out_ref[...] = (acc + b_ref[...]).astype(out_ref.dtype)


def init_params(key):
    """Deterministic init mimicking torch.nn.Linear default U(-1/sqrt(in), 1/sqrt(in))."""
    k1, k2, k3, k4 = jax.random.split(key, 4)
    bound = 1.0 / math.sqrt(IN_DIM)
    w_emo = jax.random.uniform(k1, (IN_DIM, OUT_EMO), jnp.float32, -bound, bound)
    b_emo = jax.random.uniform(k2, (1, OUT_EMO), jnp.float32, -bound, bound)
    w_sen = jax.random.uniform(k3, (IN_DIM, OUT_SEN), jnp.float32, -bound, bound)
    b_sen = jax.random.uniform(k4, (1, OUT_SEN), jnp.float32, -bound, bound)
    return w_emo, b_emo, w_sen, b_sen


def fuse_head_params(params):
    """One-time fusion of the two heads into a single [199,9] weight / [1,9] bias.

    Call this once (outside the dispatch path) and pass the result to
    simple_multimodal_forward; avoids per-call concats and extra kernel inputs.
    """
    w_emo, b_emo, w_sen, b_sen = params
    w_fused = jnp.concatenate([w_emo, w_sen], axis=1)   # [199, 9]
    b_fused = jnp.concatenate([b_emo, b_sen], axis=1)   # [1, 9]
    return w_fused, b_fused


def _pick_batch_tile(B):
    """Batch tile + grid: single tile for tiny B, otherwise an even number of
    steps (>= 2) so v7x's two TensorCores both get work, tile capped at MAX_TB."""
    if B <= SMALL_B:
        return B, (1,)
    n_steps = 2 * pl.cdiv(B, 2 * MAX_TB)          # smallest even count with tile <= MAX_TB
    tb = _round_up(pl.cdiv(B, n_steps), 8)        # (8,128) sublane rule
    return tb, (pl.cdiv(B, tb),)


def simple_multimodal_forward(x, fused_params, *, use_bf16=False, min_pallas_batch=0):
    """x = (a_features [B,88], v_features [B,64], t_features [B,47]).

    fused_params = (w_fused [199,9], b_fused [1,9]) from fuse_head_params().
    use_bf16: stream activations+weights as bf16 (f32 accumulation kept).
    min_pallas_batch: below this batch size use a plain-XLA GEMV (launch
    overhead dominates a pallas_call for tiny B). Default 0 = always Pallas.
    """
    a_features, v_features, t_features = x
    w_fused, b_fused = fused_params
    B = a_features.shape[0]

    if B < min_pallas_batch:
        fused = jnp.concatenate([a_features, v_features, t_features], axis=-1)
        out = fused @ w_fused + b_fused
        return {"emo": out[:, :OUT_EMO], "sen": out[:, OUT_EMO:]}

    if use_bf16:
        a_features = a_features.astype(jnp.bfloat16)
        v_features = v_features.astype(jnp.bfloat16)
        t_features = t_features.astype(jnp.bfloat16)
        w_fused = w_fused.astype(jnp.bfloat16)
        # bias stays f32 (negligible bytes, keeps the add exact)

    tb, grid = _pick_batch_tile(B)

    fused_out = pl.pallas_call(
        _head_kernel,
        out_shape=jax.ShapeDtypeStruct((B, OUT_TOTAL), jnp.float32),
        grid_spec=pltpu.PrefetchScalarGridSpec(
            num_scalar_prefetch=0,
            grid=grid,
            in_specs=[
                pl.BlockSpec((tb, A_DIM), lambda i: (i, 0)),          # audio tile
                pl.BlockSpec((tb, V_DIM), lambda i: (i, 0)),          # video tile
                pl.BlockSpec((tb, T_DIM), lambda i: (i, 0)),          # text tile
                pl.BlockSpec((IN_DIM, OUT_TOTAL), lambda i: (0, 0)),  # fused weight (resident)
                pl.BlockSpec((1, OUT_TOTAL), lambda i: (0, 0)),       # fused bias (resident)
            ],
            out_specs=pl.BlockSpec((tb, OUT_TOTAL), lambda i: (i, 0)),
        ),
        compiler_params=pltpu.CompilerParams(
            # Batch tiles are independent -> shard across v7x's 2 TensorCores
            # (verify in xprof; switch to pltpu.CORE_PARALLEL if one TC idles).
            dimension_semantics=("parallel",),
            # TB=8192 double-buffered tiles ~= 13.6 MiB; raise the scoped limit
            # past v5e's 16 MiB default so the compiler keeps full buffering.
            vmem_limit_bytes=VMEM_LIMIT_BYTES,
        ),
    )(a_features, v_features, t_features, w_fused, b_fused)

    return {"emo": fused_out[:, :OUT_EMO], "sen": fused_out[:, OUT_EMO:]}


def _reference_forward(x, params):
    a, v, t = x
    fused = jnp.concatenate([a, v, t], axis=-1)
    w_emo, b_emo, w_sen, b_sen = params
    return {
        "emo": fused @ w_emo + b_emo,
        "sen": fused @ w_sen + b_sen,
    }


if __name__ == "__main__":
    key = jax.random.PRNGKey(0)
    k_param, k_a, k_v, k_t = jax.random.split(key, 4)

    params = init_params(k_param)
    fused_params = fuse_head_params(params)       # one-time weight fusion

    # --- small demo shape (B=2), f32, Pallas path ---
    B = 2
    a_features = jax.random.normal(k_a, (B, A_DIM), jnp.float32)
    v_features = jax.random.normal(k_v, (B, V_DIM), jnp.float32)
    t_features = jax.random.normal(k_t, (B, T_DIM), jnp.float32)
    x = (a_features, v_features, t_features)

    out = simple_multimodal_forward(x, fused_params)
    out = jax.tree_util.tree_map(jax.block_until_ready, out)
    ref = _reference_forward(x, params)
    assert out["emo"].shape == (B, OUT_EMO)
    assert out["sen"].shape == (B, OUT_SEN)
    assert jnp.allclose(out["emo"], ref["emo"], atol=1e-4)
    assert jnp.allclose(out["sen"], ref["sen"], atol=1e-4)

    # --- partial-tile correctness: B not a multiple of the batch tile ---
    B2 = 5000  # > SMALL_B -> 2 grid steps, second tile partially out of bounds
    k_a2, k_v2, k_t2 = jax.random.split(jax.random.PRNGKey(1), 3)
    x2 = (
        jax.random.normal(k_a2, (B2, A_DIM), jnp.float32),
        jax.random.normal(k_v2, (B2, V_DIM), jnp.float32),
        jax.random.normal(k_t2, (B2, T_DIM), jnp.float32),
    )
    out2 = simple_multimodal_forward(x2, fused_params)
    out2 = jax.tree_util.tree_map(jax.block_until_ready, out2)
    ref2 = _reference_forward(x2, params)
    assert jnp.allclose(out2["emo"], ref2["emo"], atol=1e-4)
    assert jnp.allclose(out2["sen"], ref2["sen"], atol=1e-4)

    # --- optional bf16 streaming path (f32 accumulation), loose tolerance ---
    out_bf = simple_multimodal_forward(x, fused_params, use_bf16=True)
    out_bf = jax.tree_util.tree_map(jax.block_until_ready, out_bf)
    assert jnp.allclose(out_bf["emo"], ref["emo"], atol=1e-1)
    assert jnp.allclose(out_bf["sen"], ref["sen"], atol=1e-1)

    print("KERNEL_OK")
</pallas_src>

<mosaic_0001>
module attributes {stable_mosaic.version = 11 : i64} {
  func.func @_head_kernel(%arg0: i32, %arg1: memref<2x88xf32, #tpu.memory_space<vmem>>, %arg2: memref<2x64xf32, #tpu.memory_space<vmem>>, %arg3: memref<2x47xf32, #tpu.memory_space<vmem>>, %arg4: memref<199x9xf32, #tpu.memory_space<vmem>>, %arg5: memref<1x9xf32, #tpu.memory_space<vmem>>, %arg6: memref<2x9xf32, #tpu.memory_space<vmem>>) attributes {dimension_semantics = [#tpu.dimension_semantics<parallel>], iteration_bounds = array<i64: 1>, scalar_prefetch = 0 : i64, scratch_operands = 0 : i64, tpu.core_type = #tpu.core_type<tc>, window_params = [{transform_indices = @transform_0, window_bounds = array<i64: 2, 88>}, {transform_indices = @transform_1, window_bounds = array<i64: 2, 64>}, {transform_indices = @transform_2, window_bounds = array<i64: 2, 47>}, {pipeline_mode = #tpu.pipeline_mode<synchronous>, transform_indices = @transform_3, window_bounds = array<i64: 199, 9>}, {pipeline_mode = #tpu.pipeline_mode<synchronous>, transform_indices = @transform_4, window_bounds = array<i64: 1, 9>}, {transform_indices = @transform_5, window_bounds = array<i64: 2, 9>}]} {
    %c0 = arith.constant 0 : index
    %c0_0 = arith.constant 0 : index
    %0 = vector.load %arg1[%c0, %c0_0] : memref<2x88xf32, #tpu.memory_space<vmem>>, vector<2x88xf32>
    %c0_1 = arith.constant 0 : index
    %c0_2 = arith.constant 0 : index
    %1 = vector.load %arg4[%c0_1, %c0_2] : memref<199x9xf32, #tpu.memory_space<vmem>>, vector<88x9xf32>
    %cst = arith.constant dense<0.000000e+00> : vector<2x9xf32>
    %2 = tpu.matmul %0, %1, %cst {dimension_numbers = #tpu.dot_dimension_numbers<[1], [0], [0], [1], [0, 0, 1, 1], [], []>} : vector<2x88xf32>, vector<88x9xf32>, vector<2x9xf32> -> vector<2x9xf32>
    %c0_3 = arith.constant 0 : index
    %c0_4 = arith.constant 0 : index
    %3 = vector.load %arg2[%c0_3, %c0_4] : memref<2x64xf32, #tpu.memory_space<vmem>>, vector<2x64xf32>
    %c88 = arith.constant 88 : index
    %c0_5 = arith.constant 0 : index
    %4 = vector.load %arg4[%c88, %c0_5] : memref<199x9xf32, #tpu.memory_space<vmem>>, vector<64x9xf32>
    %cst_6 = arith.constant dense<0.000000e+00> : vector<2x9xf32>
    %5 = tpu.matmul %3, %4, %cst_6 {dimension_numbers = #tpu.dot_dimension_numbers<[1], [0], [0], [1], [0, 0, 1, 1], [], []>} : vector<2x64xf32>, vector<64x9xf32>, vector<2x9xf32> -> vector<2x9xf32>
    %6 = arith.addf %2, %5 : vector<2x9xf32>
    %c0_7 = arith.constant 0 : index
    %c0_8 = arith.constant 0 : index
    %7 = vector.load %arg3[%c0_7, %c0_8] : memref<2x47xf32, #tpu.memory_space<vmem>>, vector<2x47xf32>
    %c152 = arith.constant 152 : index
    %c0_9 = arith.constant 0 : index
    %8 = vector.load %arg4[%c152, %c0_9] : memref<199x9xf32, #tpu.memory_space<vmem>>, vector<47x9xf32>
    %cst_10 = arith.constant dense<0.000000e+00> : vector<2x9xf32>
    %9 = tpu.matmul %7, %8, %cst_10 {dimension_numbers = #tpu.dot_dimension_numbers<[1], [0], [0], [1], [0, 0, 1, 1], [], []>} : vector<2x47xf32>, vector<47x9xf32>, vector<2x9xf32> -> vector<2x9xf32>
    %10 = arith.addf %6, %9 : vector<2x9xf32>
    %c0_11 = arith.constant 0 : index
    %c0_12 = arith.constant 0 : index
    %11 = vector.load %arg5[%c0_11, %c0_12] : memref<1x9xf32, #tpu.memory_space<vmem>>, vector<1x9xf32>
    %12 = vector.broadcast %11 : vector<1x9xf32> to vector<2x9xf32>
    %13 = arith.addf %10, %12 : vector<2x9xf32>
    %c0_13 = arith.constant 0 : index
    %c0_14 = arith.constant 0 : index
    %14 = vector.load %arg6[%c0_13, %c0_14] : memref<2x9xf32, #tpu.memory_space<vmem>>, vector<2x9xf32>
    tpu.vector_store %arg6[%c0_13, %c0_14], %13 {strides = array<i32>} : memref<2x9xf32, #tpu.memory_space<vmem>>, vector<2x9xf32>,
    return
  }
  func.func @transform_0(%arg0: i32) -> (i32, i32) {
    %c0_i32 = arith.constant 0 : i32
    %c0_i32_0 = arith.constant 0 : i32
    return %arg0, %c0_i32 : i32, i32
  }
  func.func @transform_1(%arg0: i32) -> (i32, i32) {
    %c0_i32 = arith.constant 0 : i32
    %c0_i32_0 = arith.constant 0 : i32
    return %arg0, %c0_i32 : i32, i32
  }
  func.func @transform_2(%arg0: i32) -> (i32, i32) {
    %c0_i32 = arith.constant 0 : i32
    %c0_i32_0 = arith.constant 0 : i32
    return %arg0, %c0_i32 : i32, i32
  }
  func.func @transform_3(%arg0: i32) -> (i32, i32) {
    %c0_i32 = arith.constant 0 : i32
    %c0_i32_0 = arith.constant 0 : i32
    %c0_i32_1 = arith.constant 0 : i32
    return %c0_i32, %c0_i32_0 : i32, i32
  }
  func.func @transform_4(%arg0: i32) -> (i32, i32) {
    %c0_i32 = arith.constant 0 : i32
    %c0_i32_0 = arith.constant 0 : i32
    %c0_i32_1 = arith.constant 0 : i32
    return %c0_i32, %c0_i32_0 : i32, i32
  }
  func.func @transform_5(%arg0: i32) -> (i32, i32) {
    %c0_i32 = arith.constant 0 : i32
    %c0_i32_0 = arith.constant 0 : i32
    return %arg0, %c0_i32 : i32, i32
  }
}

</mosaic_0001>

<bundles_post_ra>
// kernel: tpu_custom_call.1
= control target key start
LH: loop header
LB: loop body
LE: loop exit
PB: predicated region body
PF: predicated region fallthrough
CT: control target
= control target key end

     0   :  { %vm101_vm0 = vcmask 1046528   ;;  %s302_s0 = inlined_call_operand.vmem [shape: f32[2,88], index: 0, kind: input, shape index: {}]   ;;  %s303_s1 = inlined_call_operand.vmem [shape: f32[2,64], index: 1, kind: input, shape index: {}]   ;;  %s304_s2 = inlined_call_operand.vmem [shape: f32[2,47], index: 2, kind: input, shape index: {}]   ;;  %s305_s3 = inlined_call_operand.vmem [shape: f32[199,9], index: 3, kind: input, shape index: {}]   ;;  %s306_s4 = inlined_call_operand.vmem [shape: f32[1,9], index: 4, kind: input, shape index: {}]   ;;  %s307_s5 = inlined_call_operand.hbm [shape: f32[2,9], index: 5, kind: output, shape index: {}]  }
   0x1   :  { %v32_v0 = vld [vmem:[%s305_s3 + $0x50] sm:$0xff]  ;;  %v31_v1 = vld [vmem:[%s305_s3 + $0x48] sm:$0xff]  ;;  %v96_v3 = vld [vmem:[%s305_s3 + $0xc0] sm:$0x7f] }
   0x2   :  { %75 = vmatpush.msra.mxu1 %v32_v0  ;;  %v41_v2 = vld [vmem:[%s305_s3 + $0x90] sm:$0xff]  ;;  %v30_v4 = vld [vmem:[%s305_s3 + $0x40] sm:$0xff]  ;;  %151 = vmatpush.msk.msra.mxu2 %vm101_vm0, %v96_v3  ;;  %v40_v5 = vld [vmem:[%s305_s3 + $0x88] sm:$0xff] }
   0x3   :  { %54 = vmatpush.msra.mxu0 %v41_v2  ;;  %v95_v6 = vld [vmem:[%s305_s3 + $0xb8] sm:$0xff]  ;;  %v39_v7 = vld [vmem:[%s305_s3 + $0x80] sm:$0xff]  ;;  %v94_v8 = vld [vmem:[%s305_s3 + $0xb0] sm:$0xff] }
   0x4   :  { %76 = vmatpush.msra.mxu1 %v31_v1  ;;  %v29_v9 = vld [vmem:[%s305_s3 + $0x38] sm:$0xff]  ;;  %116 = vmatpush.msra.mxu2 %v95_v6  ;;  %v93_v11 = vld [vmem:[%s305_s3 + $0xa8] sm:$0xff]  ;;  %v28_v12 = vld [vmem:[%s305_s3 + $0x30] sm:$0xff] }
   0x5   :  { %55 = vmatpush.msra.mxu0 %v40_v5  ;;  %v38_v10 = vld [vmem:[%s305_s3 + $0x78] sm:$0xff]  ;;  %v37_v13 = vld [vmem:[%s305_s3 + $0x70] sm:$0xff]  ;;  %v92_v14 = vld [vmem:[%s305_s3 + $0xa0] sm:$0xff] }
   0x6   :  { %77 = vmatpush.msra.mxu1 %v30_v4  ;;  %117 = vmatpush.msra.mxu2 %v94_v8  ;;  %v27_v15 = vld [vmem:[%s305_s3 + $0x28] sm:$0xff]  ;;  %v91_v17 = vld [vmem:[%s305_s3 + $0x98] sm:$0xff] }
   0x7   :  { %56 = vmatpush.msra.mxu0 %v39_v7  ;;  %v36_v16 = vld [vmem:[%s305_s3 + $0x68] sm:$0xff] }
   0x8   :  { %78 = vmatpush.msra.mxu1 %v29_v9  ;;  %118 = vmatpush.msra.mxu2 %v93_v11 }
   0x9   :  { %57 = vmatpush.msra.mxu0 %v38_v10 }
   0xa   :  { %79 = vmatpush.msra.mxu1 %v28_v12 }
   0xb   :  { %10 = vsyncpa [#allocation3], 0  ;;  %v26_v18 = vld [vmem:[%s305_s3 + $0x20] sm:$0xff]  ;;  %58 = vmatpush.msra.mxu0 %v37_v13  ;;  %119 = vmatpush.msra.mxu2 %v92_v14  ;;  %vm97_vm1 = vcmask 384000   ;;  %v25_v21 = vld [vmem:[%s305_s3 + $0x18] sm:$0xff]  ;;  %vm42_vm2 = vcmask 523264  }
   0xc   :  { %v90_v19 = vld [vmem:[%s304_s2] sm:$0x3]  ;;  %80 = vmatpush.msra.mxu1 %v27_v15  ;;  %v34_v22 = vld [vmem:[%s305_s3 + $0x58] sm:$0xff]  ;;  %v24_v23 = vld [vmem:[%s305_s3 + $0x10] sm:$0xff]  ;;  %vm66_vm3 = vcmask 719872   ;;  %s181_s24 = smov [#allocation2]  }
   0xd   :  { %v35_v20 = vld [vmem:[%s305_s3 + $0x60] sm:$0xff]  ;;  %59 = vmatpush.msra.mxu0 %v36_v16  ;;  %120 = vmatpush.msra.mxu2 %v91_v17  ;;  %v23_v25 = vld [vmem:[%s305_s3 + $0x8] sm:$0xff]  ;;  %s138_s25 = sshll.u32 %s181_s24, 4  ;;  %s140_s27 = sshll.u32 %s307_s5, 4  ;;  %vm131_vm4 = vcmask 66560   ;;  %s139_s25 = int_to_ptr.vmem [resolvable:$true] %s138_s25  ;;  %s141_s27 = int_to_ptr.hbm [resolvable:$true] %s140_s27 }
   0xe   :  { %81 = vmatpush.msra.mxu1 %v26_v18  ;;  %152 = vmatmul.msk.f32.vlgmr.msra.gmra.mxu2 %vm97_vm1, %v90_v19  ;;  %v33_v24 = vld [vmem:[%s303_s1] sm:$0x3] }
   0xf   :  { %60 = vmatpush.msra.mxu0 %v35_v20  ;;  %v22_v26 = vld [vmem:[%s305_s3] sm:$0xff] }
  0x10   :  { %82 = vmatpush.msra.mxu1 %v25_v21  ;;  %v21_v27 = vld [vmem:[%s302_s0] sm:$0x3] }
  0x11   :  { %61 = vmatpush.msra.mxu0 %v34_v22  ;;  %v154_v32 = vld [vmem:[%s306_s4] ss:$0 sm:$0xff] }
  0x12   :  { %83 = vmatpush.msra.mxu1 %v24_v23  ;;  %149 = vmatmul.msk.f32.vlgmr.msra.gmra.mxu0 %vm42_vm2, %v33_v24 }
  0x14   :  { %84 = vmatpush.msra.mxu1 %v23_v25 }
  0x16   :  { %85 = vmatpush.msra.mxu1 %v22_v26 }
  0x17   :  { %150 = vmatmul.msk.f32.vlgmr.msra.gmra.mxu1 %vm66_vm3, %v21_v27 }
  0x8f   :  { %v63_v28 = vpop.f32.mrf.mxu0 }
  0x91   :  { %v122_v30 = vpop.f32.mrf.mxu2 }
  0x94   :  { %v87_v29 = vpop.f32.mrf.mxu1 }
  0x95   :  { %v88_v31 = vadd.f32 %v87_v29, %v63_v28 }
  0x97   :  { %v125_v33 = vadd.f32 %v122_v30, %v88_v31 }
  0x99   :  { %v130_v34 = vadd.f32 %v154_v32, %v125_v33 }
  0x9b   :  { %132 = vst.msk [vmem:[#allocation2] sm:$0x3] %vm131_vm4, %v130_v34 }
  0x9c   :  { %143 = dma.vmem_to_hbm [thread:$0]  %s139_s25, 32, %s141_s27, [#allocation3]  }
  0x9d   :  { %179 = dma.done.wait [#allocation3], 32  }
  0x9e   :  { %180 = vsyncadd [#allocation3], 4294967264 }
  0x9f   :  { %148 = vsyncpa [#allocation3], 1 }

</bundles_post_ra>
